<compile_context>
chip_gen: v6e
topology: v6e:2x2x1
jax: 0.10.0
libtpu: 0.0.40
codegen_flags: <defaults>
</compile_context>

<pallas_src>
import functools

import jax
import jax.numpy as jnp
from jax.experimental import pallas as pl
from jax.experimental.pallas import tpu as pltpu


def _detect_head_kernel(x_ref, wc_ref, bc_ref, wr_ref, br_ref, psm_ref, rm_ref,
                        *, c_in, use_mxu):
    # x_ref:   (Nb, C, TL)   Nb batch images, TL spatial pixels on the lane axis
    # wc_ref:  (A, C)        cls weights        bc_ref: (A, 1) cls bias
    # wr_ref:  (R, C)        reg weights        br_ref: (R, 1) reg bias
    # psm_ref: (Nb, A, TL)   cls output slab (lane-dense)
    # rm_ref:  (Nb, R, TL)   reg output slab (lane-dense)
    wc = wc_ref[...].astype(jnp.float32)
    bc = bc_ref[...].astype(jnp.float32)
    wr = wr_ref[...].astype(jnp.float32)
    br = br_ref[...].astype(jnp.float32)

    nb = x_ref.shape[0]
    for n in range(nb):  # static unroll; Nb is small
        x = x_ref[n].astype(jnp.float32)  # (C, TL)
        if use_mxu:
            # Larger channel counts: MXU matmuls (accumulate in f32).
            pc = jnp.dot(wc, x, preferred_element_type=jnp.float32) + bc
            pr = jnp.dot(wr, x, preferred_element_type=jnp.float32) + br
        else:
            # Tiny contraction: unrolled VPU broadcast-FMAs (MXU fill/drain + result
            # FIFO pops would be wasted on a 4-deep contraction).  First FMA
            # initializes the accumulator; bias added once at the end.
            pc = wc[:, 0:1] * x[0:1, :]
            pr = wr[:, 0:1] * x[0:1, :]
            for c in range(1, c_in):
                pc = pc + wc[:, c:c + 1] * x[c:c + 1, :]
                pr = pr + wr[:, c:c + 1] * x[c:c + 1, :]
            pc = pc + bc
            pr = pr + br
        # Each head's slab starts at sublane 0 -> two plain lane-dense stores.
        psm_ref[n] = pc.astype(psm_ref.dtype)
        rm_ref[n] = pr.astype(rm_ref.dtype)


def _vpu_mxu_cutoff():
    """Channel-count threshold below which the VPU FMA path is used."""
    try:
        kind = jax.devices()[0].device_kind.lower()
    except Exception:
        return 8
    if "v5e" in kind or "v5 lite" in kind or "v5lite" in kind:
        return 16  # v5e: 128-wide MXU poorly used by tiny heads; VALU hides under HBM
    return 8


def detect_head_forward(x_nchw, w_cls, b_cls, w_reg, b_reg, *,
                        out_dtype=None,
                        max_lane_tile=65536,
                        vmem_step_budget_bytes=6 << 20):
    """x_nchw: (N, C, H, W); w_cls: (A, C); b_cls: (A,); w_reg: (7A, C); b_reg: (7A,)."""
    N, C, H, W = x_nchw.shape
    A = w_cls.shape[0]
    R = w_reg.shape[0]          # 7 * A
    HW = H * W
    out_dtype = x_nchw.dtype if out_dtype is None else jnp.dtype(out_dtype)

    # Pure reshape (no transpose): NCHW is already channel-major per image.
    x3 = x_nchw.reshape(N, C, HW)

    # --- tile sizing: HBM-BW-bound, so make per-step working sets as big as the
    # VMEM budget allows (budget is per buffer; BlockSpec double-buffers -> ~2x). ---
    in_bytes = jnp.dtype(x3.dtype).itemsize
    out_bytes = jnp.dtype(out_dtype).itemsize
    per_image_lane_bytes = C * in_bytes + (A + R) * out_bytes

    hw_r = pl.cdiv(HW, 128) * 128
    max_lanes = max(128, int(vmem_step_budget_bytes // per_image_lane_bytes))
    tl = min(hw_r, max_lane_tile, (max_lanes // 128) * 128)
    tl = max(tl, 128)
    n_t = pl.cdiv(HW, tl)

    # If a whole image fits in one lane tile, block several batch images per step,
    # but keep >= 2 grid steps (when N >= 2) so v7x's second TensorCore gets work.
    if n_t == 1 and N > 1:
        nb = max(1, max_lanes // hw_r)
        nb = min(nb, N, pl.cdiv(N, 2))
    else:
        nb = 1
    n_b = pl.cdiv(N, nb)

    # Tiny per-head params stay in f32 (no fusion/concat, no dtype cast through x3).
    bc = b_cls.reshape(A, 1)
    br = b_reg.reshape(R, 1)

    kernel = functools.partial(_detect_head_kernel, c_in=C,
                               use_mxu=(C > _vpu_mxu_cutoff()))

    psm, rm = pl.pallas_call(
        kernel,
        out_shape=(
            jax.ShapeDtypeStruct((N, A, HW), out_dtype),
            jax.ShapeDtypeStruct((N, R, HW), out_dtype),
        ),
        grid_spec=pltpu.PrefetchScalarGridSpec(
            num_scalar_prefetch=0,
            grid=(n_b, n_t),
            in_specs=[
                pl.BlockSpec((nb, C, tl), lambda b, t: (b, 0, t)),   # x slab
                pl.BlockSpec((A, C), lambda b, t: (0, 0)),           # cls weight (resident)
                pl.BlockSpec((A, 1), lambda b, t: (0, 0)),           # cls bias
                pl.BlockSpec((R, C), lambda b, t: (0, 0)),           # reg weight (resident)
                pl.BlockSpec((R, 1), lambda b, t: (0, 0)),           # reg bias
            ],
            out_specs=[
                pl.BlockSpec((nb, A, tl), lambda b, t: (b, 0, t)),   # psm slab (lane-dense)
                pl.BlockSpec((nb, R, tl), lambda b, t: (b, 0, t)),   # rm slab (lane-dense)
            ],
        ),
        compiler_params=pltpu.CompilerParams(
            # Both axes are independent -> fully parallel (lets v7x use both TCs).
            dimension_semantics=("parallel", "parallel"),
        ),
    )(x3, w_cls, bc, w_reg, br)

    # Outputs are already channel-major and exactly (N, head, HW): just reshape.
    return {"psm": psm.reshape(N, A, H, W), "rm": rm.reshape(N, R, H, W)}


if __name__ == "__main__":
    # Module config: args = {'channel': 4, 'anchor_number': 2}
    N, C, H, W = 2, 4, 16, 16
    A = 2
    R = 7 * A

    key = jax.random.PRNGKey(0)
    kx, kwc, kbc, kwr, kbr = jax.random.split(key, 5)

    x = jax.random.normal(kx, (N, C, H, W), dtype=jnp.float32)
    # Synthetic weights matching nn.Conv2d(kernel_size=1) shapes (out, in, 1, 1) squeezed.
    w_cls = jax.random.normal(kwc, (A, C), dtype=jnp.float32) * 0.1
    b_cls = jax.random.normal(kbc, (A,), dtype=jnp.float32) * 0.1
    w_reg = jax.random.normal(kwr, (R, C), dtype=jnp.float32) * 0.1
    b_reg = jax.random.normal(kbr, (R,), dtype=jnp.float32) * 0.1

    out = detect_head_forward(x, w_cls, b_cls, w_reg, b_reg)
    jax.block_until_ready(out)

    # Pure-JAX reference check (1x1 conv == per-pixel matmul).
    psm_ref = jnp.einsum("nchw,ac->nahw", x, w_cls) + b_cls[None, :, None, None]
    rm_ref = jnp.einsum("nchw,rc->nrhw", x, w_reg) + b_reg[None, :, None, None]
    assert out["psm"].shape == (N, A, H, W)
    assert out["rm"].shape == (N, R, H, W)
    assert jnp.allclose(out["psm"], psm_ref, atol=1e-5)
    assert jnp.allclose(out["rm"], rm_ref, atol=1e-5)

    print("KERNEL_OK")
</pallas_src>

<mosaic_0001>
module attributes {stable_mosaic.version = 11 : i64} {
  func.func @_detect_head_kernel(%arg0: i32, %arg1: i32, %arg2: memref<1x4x256xf32, #tpu.memory_space<vmem>>, %arg3: memref<2x4xf32, #tpu.memory_space<vmem>>, %arg4: memref<2x1xf32, #tpu.memory_space<vmem>>, %arg5: memref<14x4xf32, #tpu.memory_space<vmem>>, %arg6: memref<14x1xf32, #tpu.memory_space<vmem>>, %arg7: memref<1x2x256xf32, #tpu.memory_space<vmem>>, %arg8: memref<1x14x256xf32, #tpu.memory_space<vmem>>) attributes {dimension_semantics = [#tpu.dimension_semantics<parallel>, #tpu.dimension_semantics<parallel>], iteration_bounds = array<i64: 2, 1>, scalar_prefetch = 0 : i64, scratch_operands = 0 : i64, tpu.core_type = #tpu.core_type<tc>, window_params = [{transform_indices = @transform_0, window_bounds = array<i64: 1, 4, 256>}, {pipeline_mode = #tpu.pipeline_mode<synchronous>, transform_indices = @transform_1, window_bounds = array<i64: 2, 4>}, {pipeline_mode = #tpu.pipeline_mode<synchronous>, transform_indices = @transform_2, window_bounds = array<i64: 2, 1>}, {pipeline_mode = #tpu.pipeline_mode<synchronous>, transform_indices = @transform_3, window_bounds = array<i64: 14, 4>}, {pipeline_mode = #tpu.pipeline_mode<synchronous>, transform_indices = @transform_4, window_bounds = array<i64: 14, 1>}, {transform_indices = @transform_5, window_bounds = array<i64: 1, 2, 256>}, {transform_indices = @transform_6, window_bounds = array<i64: 1, 14, 256>}]} {
    %c0 = arith.constant 0 : index
    %c0_0 = arith.constant 0 : index
    %0 = vector.load %arg3[%c0, %c0_0] : memref<2x4xf32, #tpu.memory_space<vmem>>, vector<2x4xf32>
    %c0_1 = arith.constant 0 : index
    %c0_2 = arith.constant 0 : index
    %1 = vector.load %arg4[%c0_1, %c0_2] : memref<2x1xf32, #tpu.memory_space<vmem>>, vector<2x1xf32>
    %c0_3 = arith.constant 0 : index
    %c0_4 = arith.constant 0 : index
    %2 = vector.load %arg5[%c0_3, %c0_4] : memref<14x4xf32, #tpu.memory_space<vmem>>, vector<14x4xf32>
    %c0_5 = arith.constant 0 : index
    %c0_6 = arith.constant 0 : index
    %3 = vector.load %arg6[%c0_5, %c0_6] : memref<14x1xf32, #tpu.memory_space<vmem>>, vector<14x1xf32>
    %c0_7 = arith.constant 0 : index
    %c0_8 = arith.constant 0 : index
    %c0_9 = arith.constant 0 : index
    %4 = vector.load %arg2[%c0_7, %c0_8, %c0_9] : memref<1x4x256xf32, #tpu.memory_space<vmem>>, vector<1x4x256xf32>
    %5 = vector.shape_cast %4 : vector<1x4x256xf32> to vector<4x256xf32>
    %6 = vector.extract_strided_slice %0 {offsets = [0, 0], sizes = [2, 1], strides = [1, 1]} : vector<2x4xf32> to vector<2x1xf32>
    %7 = vector.extract_strided_slice %5 {offsets = [0, 0], sizes = [1, 256], strides = [1, 1]} : vector<4x256xf32> to vector<1x256xf32>
    %8 = vector.broadcast %6 : vector<2x1xf32> to vector<2x256xf32>
    %9 = vector.broadcast %7 : vector<1x256xf32> to vector<2x256xf32>
    %10 = arith.mulf %8, %9 : vector<2x256xf32>
    %11 = vector.extract_strided_slice %2 {offsets = [0, 0], sizes = [14, 1], strides = [1, 1]} : vector<14x4xf32> to vector<14x1xf32>
    %12 = vector.extract_strided_slice %5 {offsets = [0, 0], sizes = [1, 256], strides = [1, 1]} : vector<4x256xf32> to vector<1x256xf32>
    %13 = vector.broadcast %11 : vector<14x1xf32> to vector<14x256xf32>
    %14 = vector.broadcast %12 : vector<1x256xf32> to vector<14x256xf32>
    %15 = arith.mulf %13, %14 : vector<14x256xf32>
    %16 = vector.extract_strided_slice %0 {offsets = [0, 1], sizes = [2, 1], strides = [1, 1]} : vector<2x4xf32> to vector<2x1xf32>
    %17 = vector.extract_strided_slice %5 {offsets = [1, 0], sizes = [1, 256], strides = [1, 1]} : vector<4x256xf32> to vector<1x256xf32>
    %18 = vector.broadcast %16 : vector<2x1xf32> to vector<2x256xf32>
    %19 = vector.broadcast %17 : vector<1x256xf32> to vector<2x256xf32>
    %20 = arith.mulf %18, %19 : vector<2x256xf32>
    %21 = arith.addf %10, %20 : vector<2x256xf32>
    %22 = vector.extract_strided_slice %2 {offsets = [0, 1], sizes = [14, 1], strides = [1, 1]} : vector<14x4xf32> to vector<14x1xf32>
    %23 = vector.extract_strided_slice %5 {offsets = [1, 0], sizes = [1, 256], strides = [1, 1]} : vector<4x256xf32> to vector<1x256xf32>
    %24 = vector.broadcast %22 : vector<14x1xf32> to vector<14x256xf32>
    %25 = vector.broadcast %23 : vector<1x256xf32> to vector<14x256xf32>
    %26 = arith.mulf %24, %25 : vector<14x256xf32>
    %27 = arith.addf %15, %26 : vector<14x256xf32>
    %28 = vector.extract_strided_slice %0 {offsets = [0, 2], sizes = [2, 1], strides = [1, 1]} : vector<2x4xf32> to vector<2x1xf32>
    %29 = vector.extract_strided_slice %5 {offsets = [2, 0], sizes = [1, 256], strides = [1, 1]} : vector<4x256xf32> to vector<1x256xf32>
    %30 = vector.broadcast %28 : vector<2x1xf32> to vector<2x256xf32>
    %31 = vector.broadcast %29 : vector<1x256xf32> to vector<2x256xf32>
    %32 = arith.mulf %30, %31 : vector<2x256xf32>
    %33 = arith.addf %21, %32 : vector<2x256xf32>
    %34 = vector.extract_strided_slice %2 {offsets = [0, 2], sizes = [14, 1], strides = [1, 1]} : vector<14x4xf32> to vector<14x1xf32>
    %35 = vector.extract_strided_slice %5 {offsets = [2, 0], sizes = [1, 256], strides = [1, 1]} : vector<4x256xf32> to vector<1x256xf32>
    %36 = vector.broadcast %34 : vector<14x1xf32> to vector<14x256xf32>
    %37 = vector.broadcast %35 : vector<1x256xf32> to vector<14x256xf32>
    %38 = arith.mulf %36, %37 : vector<14x256xf32>
    %39 = arith.addf %27, %38 : vector<14x256xf32>
    %40 = vector.extract_strided_slice %0 {offsets = [0, 3], sizes = [2, 1], strides = [1, 1]} : vector<2x4xf32> to vector<2x1xf32>
    %41 = vector.extract_strided_slice %5 {offsets = [3, 0], sizes = [1, 256], strides = [1, 1]} : vector<4x256xf32> to vector<1x256xf32>
    %42 = vector.broadcast %40 : vector<2x1xf32> to vector<2x256xf32>
    %43 = vector.broadcast %41 : vector<1x256xf32> to vector<2x256xf32>
    %44 = arith.mulf %42, %43 : vector<2x256xf32>
    %45 = arith.addf %33, %44 : vector<2x256xf32>
    %46 = vector.extract_strided_slice %2 {offsets = [0, 3], sizes = [14, 1], strides = [1, 1]} : vector<14x4xf32> to vector<14x1xf32>
    %47 = vector.extract_strided_slice %5 {offsets = [3, 0], sizes = [1, 256], strides = [1, 1]} : vector<4x256xf32> to vector<1x256xf32>
    %48 = vector.broadcast %46 : vector<14x1xf32> to vector<14x256xf32>
    %49 = vector.broadcast %47 : vector<1x256xf32> to vector<14x256xf32>
    %50 = arith.mulf %48, %49 : vector<14x256xf32>
    %51 = arith.addf %39, %50 : vector<14x256xf32>
    %52 = vector.broadcast %1 : vector<2x1xf32> to vector<2x256xf32>
    %53 = arith.addf %45, %52 : vector<2x256xf32>
    %54 = vector.broadcast %3 : vector<14x1xf32> to vector<14x256xf32>
    %55 = arith.addf %51, %54 : vector<14x256xf32>
    %c0_10 = arith.constant 0 : index
    %c0_11 = arith.constant 0 : index
    %c0_12 = arith.constant 0 : index
    %56 = vector.load %arg7[%c0_10, %c0_11, %c0_12] : memref<1x2x256xf32, #tpu.memory_space<vmem>>, vector<1x2x256xf32>
    %57 = vector.shape_cast %56 : vector<1x2x256xf32> to vector<2x256xf32>
    %58 = vector.shape_cast %53 : vector<2x256xf32> to vector<1x2x256xf32>
    tpu.vector_store %arg7[%c0_10, %c0_11, %c0_12], %58 {strides = array<i32>} : memref<1x2x256xf32, #tpu.memory_space<vmem>>, vector<1x2x256xf32>,
    %c0_13 = arith.constant 0 : index
    %c0_14 = arith.constant 0 : index
    %c0_15 = arith.constant 0 : index
    %59 = vector.load %arg8[%c0_13, %c0_14, %c0_15] : memref<1x14x256xf32, #tpu.memory_space<vmem>>, vector<1x14x256xf32>
    %60 = vector.shape_cast %59 : vector<1x14x256xf32> to vector<14x256xf32>
    %61 = vector.shape_cast %55 : vector<14x256xf32> to vector<1x14x256xf32>
    tpu.vector_store %arg8[%c0_13, %c0_14, %c0_15], %61 {strides = array<i32>} : memref<1x14x256xf32, #tpu.memory_space<vmem>>, vector<1x14x256xf32>,
    return
  }
  func.func @transform_0(%arg0: i32, %arg1: i32) -> (i32, i32, i32) {
    %c0_i32 = arith.constant 0 : i32
    %c0_i32_0 = arith.constant 0 : i32
    return %arg0, %c0_i32, %arg1 : i32, i32, i32
  }
  func.func @transform_1(%arg0: i32, %arg1: i32) -> (i32, i32) {
    %c0_i32 = arith.constant 0 : i32
    %c0_i32_0 = arith.constant 0 : i32
    %c0_i32_1 = arith.constant 0 : i32
    return %c0_i32, %c0_i32_0 : i32, i32
  }
  func.func @transform_2(%arg0: i32, %arg1: i32) -> (i32, i32) {
    %c0_i32 = arith.constant 0 : i32
    %c0_i32_0 = arith.constant 0 : i32
    %c0_i32_1 = arith.constant 0 : i32
    return %c0_i32, %c0_i32_0 : i32, i32
  }
  func.func @transform_3(%arg0: i32, %arg1: i32) -> (i32, i32) {
    %c0_i32 = arith.constant 0 : i32
    %c0_i32_0 = arith.constant 0 : i32
    %c0_i32_1 = arith.constant 0 : i32
    return %c0_i32, %c0_i32_0 : i32, i32
  }
  func.func @transform_4(%arg0: i32, %arg1: i32) -> (i32, i32) {
    %c0_i32 = arith.constant 0 : i32
    %c0_i32_0 = arith.constant 0 : i32
    %c0_i32_1 = arith.constant 0 : i32
    return %c0_i32, %c0_i32_0 : i32, i32
  }
  func.func @transform_5(%arg0: i32, %arg1: i32) -> (i32, i32, i32) {
    %c0_i32 = arith.constant 0 : i32
    %c0_i32_0 = arith.constant 0 : i32
    return %arg0, %c0_i32, %arg1 : i32, i32, i32
  }
  func.func @transform_6(%arg0: i32, %arg1: i32) -> (i32, i32, i32) {
    %c0_i32 = arith.constant 0 : i32
    %c0_i32_0 = arith.constant 0 : i32
    return %arg0, %c0_i32, %arg1 : i32, i32, i32
  }
}

</mosaic_0001>

<bundles_post_ra>
// kernel: tpu_custom_call.1
= control target key start
LH: loop header
LB: loop body
LE: loop exit
PB: predicated region body
PF: predicated region fallthrough
CT: control target
= control target key end

     0   :  { %12 = vsyncpa [#allocation3], 0  ;;  %s1027_s0 = inlined_call_operand.vmem [shape: f32[2,4,256], index: 0, kind: input, shape index: {}]   ;;  %s1028_s1 = inlined_call_operand.vmem [shape: f32[2,4], index: 1, kind: input, shape index: {}]   ;;  %s1029_s2 = inlined_call_operand.vmem [shape: f32[2,1], index: 2, kind: input, shape index: {}]   ;;  %s1030_s3 = inlined_call_operand.vmem [shape: f32[14,4], index: 3, kind: input, shape index: {}]   ;;  %s1031_s4 = inlined_call_operand.vmem [shape: f32[14,1], index: 4, kind: input, shape index: {}]   ;;  %s1032_s5 = inlined_call_operand.hbm [shape: f32[2,2,256], index: 5, kind: output, shape index: {0}]   ;;  %s1033_s6 = inlined_call_operand.vmem [shape: f32[2,14,256], index: 6, kind: output, shape index: {1}]  }
   0x1   :  { %14 = vsyncpa [#allocation3 + $0x1], 0  ;;  %s864_s21 = smov 0   ;;  %s866_s22 = smov 0  }
   0x2   :  { %s868_s23 = smov 0   ;;  %s870_s24 = smov 0  }
   0x3   :  { %s872_s25 = smov 0   ;;  %s874_s26 = smov 0  }
   0x4 LB: > { %s658_s27 = sadd.s32 4294967295, %s822_s26   ;;  %s659_s28 = sadd.s32 4294967294, %s822_s26   ;;  %s822_s26 = sphi %s874_s26, %s20_s26   ;;  %s818_s25 = sphi %s872_s25, %s1040_s25   ;;  %s814_s24 = sphi %s870_s24, %s1039_s24   ;;  %s810_s23 = sphi %s868_s23, %s1038_s23   ;;  %s806_s22 = sphi %s866_s22, %s1037_s22   ;;  %s802_s21 = sphi %s864_s21, %s1036_s21  }
   0x5   : > { %s32_s29 = sadd.s32 1, %s818_s25  ;;  %s153_s30 = sadd.s32 1, %s810_s23 }
   0x6   : > { %p34_p0 = scmp.ge.s32.totalorder %s32_s29, 2  ;;  %p163_p1 = scmp.ne.s32.totalorder %s810_s23, %s806_s22 }
   0x7   : > { %p164_p2 = scmp.eq.s32.totalorder %s658_s27, 1  ;;  %p169_p3 = scmp.ne.s32.totalorder %s806_s22, %s802_s21 }
   0x8   : > { %s1042_s29 = smov (%p34_p0, %s32_s29), 0  ;;  %p170_p5 = scmp.eq.s32.totalorder %s659_s28, 1 }
   0x9   : > { %p904_p4 = por %p164_p2, %p163_p1  ;;  %s148_s8 = ssub.s32 %s818_s25, %s1042_s29 }
   0xa   : > { %p662_p6 = scmp.ge.s32.totalorder %s822_s26, 1  ;;  %p151_p7 = scmp.eq.s32.totalorder %s148_s8, 0 }
   0xb   : > { %p911_p8 = por %p170_p5, %p169_p3  ;;  %p241_p9 = scmp.lt.s32.totalorder %s822_s26, 3 }
   0xc   : > { %s917_s10 = scalar_select %p151_p7, %s810_s23, %s153_s30  }
   0xd   : > { %p242_p10 = pnand %p662_p6, %p241_p9 }
   0xe   : > { %p285_p11 = scmp.lt.s32.totalorder (!%p242_p10), %s814_s24, 1  ;;  %s270_s14 = sand.u32 (!%p242_p10), 1, %s806_s22  }
   0xf   : > { %245 = sbr.rel (%p242_p10) target bundleno = 194 (0xc2), region = 40  ;;  %s960_s15 = sshll.u32 (!%p242_p10), %s270_s14, 2 }
  0x10   : > { %s676_s16 = sshll.u32 (!%p242_p10), %s814_s24, 6  ;;  %s272_s17 = scalar_lea.vmem (!%p242_p10), [#allocation2], %s960_s15 }
  0x11   : > { %s541_s18 = sshll.u32 (!%p242_p10), %s272_s17, 4  ;;  %s969_s27 = scalar_lea.hbm (!%p242_p10), %s1032_s5, %s676_s16  ;;  %s971_s18 = int_to_ptr.vmem [resolvable:$true] %s541_s18 }
  0x12   : > { %s746_s28 = scalar_lea.vmem (!%p242_p10), %s971_s18, 64 }
  0x13   : > { %p747_p12 = scmp.ne.s32.totalorder (!%p242_p10), %s971_s18, %s746_s28 }
  0x14   : > { %v305_v0 = vld [vmem:[%s1028_s1] sm:$0x3]  ;;  %v824_v1 = vmov 2   ;;  %v825_v2 = vmov 0   ;;  %v826_v4 = vmov 1   ;;  %v827_v6 = vmov 3  }
  0x15   : > { %738 = vset.pattern.permute.xlu1 %v824_v1  ;;  %736 = vset.pattern.permute.xlu0 %v825_v2  ;;  %v307_v3 = vld [vmem:[%s1030_s3] sm:$0xff]  ;;  %v308_v5 = vld [vmem:[%s1030_s3 + $0x8] sm:$0x3f]  ;;  %s939_s30 = scalar_select %p285_p11, %s814_s24, 1  ;;  %v318_v10 = vlaneseq }
  0x16   : > { %395 = vperm.xlu1 %738, %v305_v0   ;;  %314 = vperm.xlu0 %736, %v305_v0   ;;  %v306_v7 = vld [vmem:[%s1029_s2] sm:$0x3]  ;;  %v310_v9 = vld [vmem:[%s1031_s4 + $0x8] sm:$0x3f]  ;;  %s516_s24 = scalar_lea.sflag [#allocation3], %s270_s14  ;;  %p748_p13 = pnand %p747_p12, %p904_p4 }
  0x17   : > { %v309_v8 = vld [vmem:[%s1031_s4] sm:$0xff]  ;;  %s674_s8 = sshll.u32 %s939_s30, 3  ;;  %v319_v11 = vshrl.u32 %v318_v10, 7 }
  0x18   : > { %s292_s13 = scalar_lea.vmem %s1027_s0, %s674_s8  ;;  %p749_p0 = pneg %p748_p13 }
  0x19   : > { %v320_v13 = vsub.s32 0, %v319_v11  ;;  %v324_v14 = vsub.s32 4, %v319_v11  ;;  %v358_v16 = vsub.s32 1, %v319_v11  ;;  %v362_v17 = vsub.s32 5, %v319_v11  ;;  %v311_v18 = vld [vmem:[%s292_s13] sm:$0xff]  ;;  %s828_s8 = smov [#allocation2]  }
  0x1a   : > { %739 = vset.pattern.permute.xlu1 %v825_v2  ;;  %737 = vset.pattern.permute.xlu0 %v826_v4  ;;  %v400_v25 = vsub.s32 2, %v319_v11  ;;  %v404_v26 = vsub.s32 6, %v319_v11  ;;  %v442_v27 = vsub.s32 3, %v319_v11  ;;  %v446_v28 = vsub.s32 7, %v319_v11  ;;  %s750_s11 = sshll.u32 %s828_s8, 4  ;;  %s751_s11 = int_to_ptr.vmem [resolvable:$false] %s750_s11 }
  0x1b   : > { %340 = vperm.xlu1 %739, %v307_v3   ;;  %353 = vperm.xlu0 %737, %v305_v0   ;;  %v321_v19 = vrot.slane %v311_v18, %v320_v13  ;;  %v325_v20 = vrot.slane %v311_v18, %v324_v14  ;;  %v359_v21 = vrot.slane %v311_v18, %v358_v16  ;;  %s752_s12 = scalar_lea.vmem %s751_s11, 128  ;;  %p753_p1 = scmp.lt.s32.totalorder %s971_s18, %s751_s11 }
  0x1c   : > { %v363_v22 = vrot.slane %v311_v18, %v362_v17  ;;  %v401_v35 = vrot.slane %v311_v18, %v400_v25  ;;  %v405_v36 = vrot.slane %v311_v18, %v404_v26  ;;  %v443_v37 = vrot.slane %v311_v18, %v442_v27  ;;  %p754_p2 = scmp.lt.s32.totalorder %s752_s12, %s746_s28 }
  0x1d   : > { %v331_v29 = vrot.slane %v321_v19, %v320_v13  ;;  %v335_v30 = vrot.slane %v325_v20, %v320_v13  ;;  %v369_v31 = vrot.slane %v359_v21, %v358_v16  ;;  %v447_v38 = vrot.slane %v311_v18, %v446_v28 }
  0x1e   : > { %v373_v32 = vrot.slane %v363_v22, %v358_v16  ;;  %v945_v43 = vrot.slane %v401_v35, %v400_v25  ;;  %v947_v44 = vrot.slane %v405_v36, %v400_v25  ;;  %v949_v47 = vrot.slane %v443_v37, %v442_v27  ;;  %p755_p3 = por %p754_p2, %p753_p1 }
  0x1f   : > { %345 = vperm.xlu1 %739, %v308_v5   ;;  %379 = vperm.xlu0 %737, %v307_v3   ;;  %v951_v48 = vrot.slane %v447_v38, %v442_v27 }
  0x20   : > { %p756_p5 = pnand %p755_p3, %p749_p0 }
  0x23   : > { %740 = vset.pattern.permute.xlu1 %v826_v4  ;;  %741 = vset.pattern.permute.xlu0 %v827_v6 }
  0x24   : > { %383 = vperm.xlu1 %740, %v308_v5   ;;  %437 = vperm.xlu0 %741, %v305_v0  }
  0x28   : > { %742 = vset.pattern.permute.xlu1 %v824_v1  ;;  %463 = vperm.xlu0 %741, %v307_v3  }
  0x29   : > { %421 = vperm.xlu1 %742, %v307_v3  }
  0x2c   : > { %744 = vset.pattern.permute.xlu0 %v825_v2 }
  0x2d   : > { %425 = vperm.xlu1 %742, %v308_v5   ;;  %480 = vperm.xlu0 %744, %v306_v7  }
  0x31   : > { %743 = vset.pattern.permute.xlu1 %v827_v6 }
  0x32   : > { %467 = vperm.xlu1 %743, %v308_v5  }
  0x36   : > { %745 = vset.pattern.permute.xlu1 %v825_v2 }
  0x37   : > { %487 = vperm.xlu1 %745, %v309_v8  }
  0x3b   : > { %492 = vperm.xlu1 %745, %v310_v9  }
  0x91   : > { %v396_v12 = vpop.permute.xlu1 %395  ;;  %v315_v15 = vpop.permute.xlu0 %314 }
  0x92   : > { %v336_v39 = vmul.f32 %v331_v29, %v315_v15  ;;  %v337_v40 = vmul.f32 %v335_v30, %v315_v15  ;;  %v416_v51 = vmul.f32 %v945_v43, %v396_v12  ;;  %v417_v52 = vmul.f32 %v947_v44, %v396_v12 }
  0x96   : > { %v341_v23 = vpop.permute.xlu1 %340  ;;  %v354_v24 = vpop.permute.xlu0 %353 }
  0x97   : > { %v374_v41 = vmul.f32 %v369_v31, %v354_v24  ;;  %v375_v42 = vmul.f32 %v373_v32, %v354_v24  ;;  %v348_v63 = vmul.f32 %v341_v23, %v331_v29  ;;  %v349_v0 = vmul.f32 %v341_v23, %v335_v30 }
  0x99   : > { %v376_v49 = vadd.f32 %v374_v41, %v336_v39  ;;  %v377_v50 = vadd.f32 %v375_v42, %v337_v40 }
  0x9a   : > { %v346_v33 = vpop.permute.xlu1 %345  ;;  %v380_v34 = vpop.permute.xlu0 %379 }
  0x9b   : > { %v418_v57 = vadd.f32 %v416_v51, %v376_v49  ;;  %v419_v58 = vadd.f32 %v417_v52, %v377_v50  ;;  %v386_v59 = vmul.f32 %v380_v34, %v369_v31  ;;  %v387_v60 = vmul.f32 %v380_v34, %v373_v32 }
  0x9c   : > { %v350_v17 = vmul.f32 %v346_v33, %v331_v29  ;;  %v351_v18 = vmul.f32 %v346_v33, %v335_v30 }
  0x9d   : > { %v390_v7 = vadd.f32 %v386_v59, %v348_v63  ;;  %v391_v8 = vadd.f32 %v387_v60, %v349_v0 }
  0x9f   : > { %v384_v45 = vpop.permute.xlu1 %383  ;;  %v438_v46 = vpop.permute.xlu0 %437 }
  0xa0   : > { %v458_v53 = vmul.f32 %v949_v47, %v438_v46  ;;  %v459_v54 = vmul.f32 %v951_v48, %v438_v46  ;;  %v388_v10 = vmul.f32 %v384_v45, %v369_v31  ;;  %v389_v11 = vmul.f32 %v384_v45, %v373_v32 }
  0xa2   : > { %v460_v61 = vadd.f32 %v458_v53, %v418_v57  ;;  %v461_v62 = vadd.f32 %v459_v54, %v419_v58 }
  0xa3   : > { %v464_v55 = vpop.permute.xlu0 %463 }
  0xa4   : > { %v422_v56 = vpop.permute.xlu1 %421  ;;  %v470_v14 = vmul.f32 %v464_v55, %v949_v47  ;;  %v471_v15 = vmul.f32 %v464_v55, %v951_v48 }
  0xa5   : > { %v428_v3 = vmul.f32 %v422_v56, %v945_v43  ;;  %v429_v4 = vmul.f32 %v422_v56, %v947_v44 }
  0xa7   : > { %v432_v12 = vadd.f32 %v428_v3, %v390_v7  ;;  %v433_v13 = vadd.f32 %v429_v4, %v391_v8 }
  0xa8   : > { %v426_v1 = vpop.permute.xlu1 %425  ;;  %v481_v2 = vpop.permute.xlu0 %480 }
  0xa9   : > { %v483_v5 = vadd.f32 %v481_v2, %v460_v61  ;;  %v484_v6 = vadd.f32 %v481_v2, %v461_v62 }
  0xab   : > { %v501_v9 = vcombine.low %v483_v5, %v484_v6 }
  0xad   : > { %v468_v16 = vpop.permute.xlu1 %467  ;;  %668 = vst.sshfl [vmem:[%s272_s17] sm:$0x33 pattern:$0x76325410] %v501_v9 }
  0xae   : > { %759 = shalt.err (!%p756_p5)
}
  0xaf   : > { %s760_s13 = scalar_lea.hbm %s969_s27, 64  ;;  %s764_s16 = scalar_lea.hbm %s1032_s5, 128 }
  0xb0   : > { %p761_p6 = scmp.ne.s32.totalorder %s969_s27, %s760_s13  ;;  %p765_p10 = scmp.lt.s32.totalorder %s969_s27, %s1032_s5 }
  0xb1   : > { %p766_p11 = scmp.lt.s32.totalorder %s764_s16, %s760_s13 }
  0xb2   : > { %p762_p7 = pnand %p761_p6, %p904_p4 }
  0xb3   : > { %p767_p12 = por %p766_p11, %p765_p10 }
  0xb4   : > { %p763_p9 = pneg %p762_p7 }
  0xb6   : > { %p768_p13 = pnand %p767_p12, %p763_p9 }
  0xb8   : > { %771 = shalt.err (!%p768_p13)
}
  0xb9   : > { %677 = dma.vmem_to_hbm [thread:$0]  (%p904_p4), %s971_s18, 64, %s969_s27, %s516_s24   ;;  %v430_v19 = vmul.f32 %v426_v1, %v945_v43  ;;  %v431_v20 = vmul.f32 %v426_v1, %v947_v44  ;;  %v392_v21 = vadd.f32 %v388_v10, %v350_v17  ;;  %v393_v22 = vadd.f32 %v389_v11, %v351_v18  ;;  %v488_v27 = vpop.permute.xlu1 %487 }
  0xba   : > { %s675_s20 = sshll.u32 %s939_s30, 5  ;;  %v472_v23 = vmul.f32 %v468_v16, %v949_v47  ;;  %v473_v24 = vmul.f32 %v468_v16, %v951_v48  ;;  %v474_v25 = vadd.f32 %v470_v14, %v432_v12  ;;  %v475_v26 = vadd.f32 %v471_v15, %v433_v13 }
  0xbb   : > { %s303_s8 = scalar_lea.vmem %s1033_s6, %s675_s20  ;;  %v434_v28 = vadd.f32 %v430_v19, %v392_v21  ;;  %v435_v29 = vadd.f32 %v431_v20, %v393_v22 }
  0xbc   : > { %v495_v30 = vadd.f32 %v488_v27, %v474_v25  ;;  %v496_v31 = vadd.f32 %v488_v27, %v475_v26 }
  0xbd   : > { %v476_v32 = vadd.f32 %v472_v23, %v434_v28  ;;  %v477_v33 = vadd.f32 %v473_v24, %v435_v29  ;;  %v493_v34 = vpop.permute.xlu1 %492 }
  0xbe   : > { %511 = vst [vmem:[%s303_s8] sm:$0xff] %v495_v30  ;;  %512 = vst [vmem:[%s303_s8 + $0x8] sm:$0xff] %v496_v31 }
  0xbf   : > { %v497_v35 = vadd.f32 %v493_v34, %v476_v32  ;;  %v498_v36 = vadd.f32 %v493_v34, %v477_v33 }
  0xc1   : > { %513 = vst [vmem:[%s303_s8 + $0x10] sm:$0x3f] %v497_v35  ;;  %514 = vst [vmem:[%s303_s8 + $0x18] sm:$0x3f] %v498_v36 }
  0xc2 PF: > { %p683_p4 = scmp.ge.s32.totalorder %s822_s26, 2  ;;  %s557_s30 = sand.u32 1, %s802_s21  }
  0xc3   : > { %s558_s18 = scalar_lea.sflag [#allocation3], %s557_s30 }
  0xc4   : > { %p680_p0 = pnand %p683_p4, %p911_p8 }
  0xc6   : > { %p681_p1 = pneg %p680_p0 }
  0xc8   : > { %797 = dma.done.wait (%p681_p1), %s558_s18, 64  }
  0xc9   : > { %799 = vsyncadd (%p681_p1), %s558_s18, 4294967232  ;;  %s20_s26 = sadd.s32 1, %s822_s26   ;;  %s1036_s21 = smov %s806_s22 }
  0xca   : > { %p17_p2 = scmp.ge.s32.totalorder %s20_s26, 4   ;;  %s1037_s22 = smov %s810_s23 }
  0xcb   : > { %s1038_s23 = smov %s917_s10  ;;  %s1039_s24 = smov %s818_s25 }
  0xcc   : > { %s1040_s25 = smov %s1042_s29  ;;  %19 = sbr.rel (!%p17_p2) target bundleno = 4 (0x4), region = 87 }
  0xd1   :  { %575 = vsyncpa [#allocation3], 1 }
  0xd2   :  { %577 = vsyncpa [#allocation3 + $0x1], 1 }

</bundles_post_ra>
